<compile_context>
chip_gen: v7x
topology: tpu7x:2x2x1
jax: 0.10.0
libtpu: 0.0.40
codegen_flags: <defaults>
</compile_context>

<pallas_src>
import functools
import math

import jax
import jax.numpy as jnp
from jax import lax
from jax.experimental import pallas as pl
from jax.experimental.pallas import tpu as pltpu


# ----------------------------- tiling helpers --------------------------------

def _round_up(x, m):
    return (x + m - 1) // m * m


def _tile_dim(dim, target):
    """Return (tile, padded_dim). Full-dim blocks are always legal; otherwise
    tile at `target` (a multiple of 8/128) and pad the dim up to a multiple."""
    if dim <= target:
        return dim, dim
    if dim % target == 0:
        return target, dim
    return target, _round_up(dim, target)


def _pick_q_tile(sq):
    for t in (512, 256, 128):
        if sq >= t and sq % t == 0:
            return t
    return sq


# ----------------------------- Pallas kernels --------------------------------

def _grouped_linear_kernel(x_ref, w_ref, b_ref, o_ref, acc_ref):
    # Grid (G, M/tm, N/tn, K/tk). Views: x (tm,tk), w (tk,tn) bf16, b (1,tn)
    # fp32, o (tm,tn), acc (tm,tn) fp32.
    k = pl.program_id(3)

    @pl.when(k == 0)
    def _():
        acc_ref[...] = jnp.zeros_like(acc_ref)

    acc_ref[...] += jnp.dot(
        x_ref[...].astype(jnp.bfloat16),
        w_ref[...].astype(jnp.bfloat16),
        preferred_element_type=jnp.float32)

    @pl.when(k == pl.num_programs(3) - 1)
    def _():
        o_ref[...] = (acc_ref[...] + b_ref[...]).astype(o_ref.dtype)


def _attention_kernel(q_ref, k_ref, v_ref, mask_ref, o_ref, w_ref, *, scale):
    # One (batch, head, q-tile) step. Views:
    #   q: (tq, depth) bf16, k/v: (Sk, depth) bf16, mask: ({1|tq}, Sk) fp32,
    #   o: (tq, depth), w: (tq, Sk)
    logits = lax.dot_general(                          # QK^T, no K transpose
        q_ref[...], k_ref[...], (((1,), (1,)), ((), ())),
        preferred_element_type=jnp.float32) * jnp.float32(scale)
    logits = logits + mask_ref[...].astype(jnp.float32) * jnp.float32(-1e9)
    m = jnp.max(logits, axis=-1, keepdims=True)
    e = jnp.exp(logits - m)
    denom = jnp.sum(e, axis=-1, keepdims=True)
    w = e / denom                                      # exact normalization
    w_ref[...] = w.astype(w_ref.dtype)                 # lane-dense (tq, Sk) store
    o_ref[...] = jnp.dot(w.astype(jnp.bfloat16), v_ref[...],
                         preferred_element_type=jnp.float32).astype(o_ref.dtype)


# ------------------------------ JAX wrappers ----------------------------------

def _grouped_linear(x2d, w_g, b_g, *, out_dtype=jnp.float32,
                    tm_target=256, tn_target=512, tk_target=512):
    """y[g] = x2d @ w_g[g] + b_g[g] for every group g in one tiled kernel.

    x2d: (M, K); w_g: (G, K, N) pre-transposed bf16; b_g: (G, 1, N) fp32.
    Returns (G, M, N) in `out_dtype`.
    """
    M, K = x2d.shape
    G, K2, N = w_g.shape
    assert K2 == K
    tm, Mp = _tile_dim(M, tm_target)
    tn, Np = _tile_dim(N, tn_target)     # tn >= d_model -> x streamed once per group
    tk, Kp = _tile_dim(K, tk_target)

    if (Mp, Kp) != (M, K):
        x2d = jnp.pad(x2d, ((0, Mp - M), (0, Kp - K)))
    if (Kp, Np) != (K, N):
        w_g = jnp.pad(w_g, ((0, 0), (0, Kp - K), (0, Np - N)))
    if Np != N:
        b_g = jnp.pad(b_g, ((0, 0), (0, 0), (0, Np - N)))

    grid = (G, Mp // tm, Np // tn, Kp // tk)
    out_bytes = G * Mp * Np * jnp.dtype(out_dtype).itemsize
    out = pl.pallas_call(
        _grouped_linear_kernel,
        grid=grid,
        in_specs=[
            pl.BlockSpec((tm, tk), lambda g, i, j, k: (i, k)),
            pl.BlockSpec((None, tk, tn), lambda g, i, j, k: (g, k, j)),
            pl.BlockSpec((None, 1, tn), lambda g, i, j, k: (g, 0, j)),
        ],
        out_specs=pl.BlockSpec((None, tm, tn), lambda g, i, j, k: (g, i, j)),
        out_shape=jax.ShapeDtypeStruct((G, Mp, Np), out_dtype),
        scratch_shapes=[pltpu.VMEM((tm, tn), jnp.float32)],
        compiler_params=pltpu.CompilerParams(
            dimension_semantics=("parallel", "parallel", "parallel", "arbitrary")),
        cost_estimate=pl.CostEstimate(
            flops=2 * G * Mp * Np * Kp,
            transcendentals=0,
            bytes_accessed=int(x2d.size * x2d.dtype.itemsize
                               + w_g.size * w_g.dtype.itemsize
                               + b_g.size * b_g.dtype.itemsize
                               + out_bytes)),
    )(x2d, w_g, b_g)
    if (Mp, Np) != (M, N):
        out = out[:, :M, :N]
    return out


def prepare_params(raw):
    """One-time parameter prep (outside the forward path).

    raw: torch.nn.Linear layout -- W: (out, in), b: (out,).
    Weights are transposed to (in, out), cast to bf16, and the q/k/v weights
    are stacked into a single (3, D, D) fused tensor.
    """
    def wt(name):
        return jnp.asarray(raw[name], jnp.float32).T.astype(jnp.bfloat16)

    def bias(name):
        return jnp.asarray(raw[name], jnp.float32).reshape(1, -1)

    return {
        # fused QKV (self-attention fast path)
        "w_qkv": jnp.stack([wt("wq_w"), wt("wk_w"), wt("wv_w")], axis=0),
        "b_qkv": jnp.stack([bias("wq_b"), bias("wk_b"), bias("wv_b")], axis=0),
        # separate projections (general / cross-attention path)
        "w_q": wt("wq_w")[None], "b_q": bias("wq_b")[None],
        "w_k": wt("wk_w")[None], "b_k": bias("wk_b")[None],
        "w_v": wt("wv_w")[None], "b_v": bias("wv_b")[None],
        # output projection
        "w_out": wt("final_w")[None], "b_out": bias("final_b")[None],
    }


def multi_head_attention(q, k, v, mask, params, num_heads,
                         attn_weights_dtype=jnp.float32):
    """Pallas MultiHeadAttention forward.

    q, k, v: (B, S, d_model) fp32. mask: broadcastable (B, 1, {1|Sq}, Sk) fp32
    (1.0 = masked), or None.
    Returns (output (B, Sq, d_model) fp32, attention_weights (B, H, Sq, Sk)).
    """
    B, Sq, D = q.shape
    Sk = k.shape[1]
    H = num_heads
    assert D % H == 0
    depth = D // H

    # NOTE: the fused fast path is gated on Python object identity; equal-but-
    # distinct arrays take the (correct) separate-projection path.
    if (q is k) and (k is v):
        proj = _grouped_linear(q.reshape(B * Sq, D), params["w_qkv"],
                               params["b_qkv"], out_dtype=jnp.bfloat16)
        # (3, B*Sq, D) bf16 -> head-major (3, B, H, Sq, depth)
        proj5 = proj.reshape(3, B, Sq, H, depth).transpose(0, 1, 3, 2, 4)
        q_src = k_src = v_src = proj5
        gq, gk, gv = 0, 1, 2
    else:
        def project(x, wn, bn, S):
            y = _grouped_linear(x.reshape(B * S, D), params[wn], params[bn],
                                out_dtype=jnp.bfloat16)
            return y.reshape(1, B, S, H, depth).transpose(0, 1, 3, 2, 4)
        q_src = project(q, "w_q", "b_q", Sq)
        k_src = project(k, "w_k", "b_k", Sk)
        v_src = project(v, "w_v", "b_v", Sk)
        gq = gk = gv = 0

    # Compact mask: (B, {1|Sq}, Sk); broadcast over heads / query rows in-kernel.
    if mask is None:
        mask3 = jnp.zeros((B, 1, Sk), jnp.float32)
    else:
        mask3 = jnp.asarray(mask, jnp.float32).reshape(B, mask.shape[-2], Sk)
    Mq = mask3.shape[1]

    tq = _pick_q_tile(Sq)
    if Mq == 1:
        mask_spec = pl.BlockSpec((None, 1, Sk), lambda b, h, qi: (b, 0, 0))
    else:
        assert Mq == Sq
        mask_spec = pl.BlockSpec((None, tq, Sk), lambda b, h, qi: (b, qi, 0))

    kern = functools.partial(_attention_kernel, scale=1.0 / math.sqrt(depth))
    attn_flops = 2 * B * H * Sq * Sk * depth * 2
    attn_bytes = (B * H * (Sq + 2 * Sk) * depth * 2          # bf16 q/k/v
                  + mask3.size * 4
                  + B * H * Sq * depth * 2                    # bf16 output
                  + B * H * Sq * Sk * jnp.dtype(attn_weights_dtype).itemsize)

    out_h, attn_w = pl.pallas_call(
        kern,
        grid=(B, H, Sq // tq),   # qi innermost -> k/v blocks stay resident
        in_specs=[
            pl.BlockSpec((None, None, None, tq, depth),
                         lambda b, h, qi: (gq, b, h, qi, 0)),
            pl.BlockSpec((None, None, None, Sk, depth),
                         lambda b, h, qi: (gk, b, h, 0, 0)),
            pl.BlockSpec((None, None, None, Sk, depth),
                         lambda b, h, qi: (gv, b, h, 0, 0)),
            mask_spec,
        ],
        out_specs=[
            pl.BlockSpec((None, None, tq, depth), lambda b, h, qi: (b, h, qi, 0)),
            pl.BlockSpec((None, None, tq, Sk), lambda b, h, qi: (b, h, qi, 0)),
        ],
        out_shape=[
            jax.ShapeDtypeStruct((B, H, Sq, depth), jnp.bfloat16),
            jax.ShapeDtypeStruct((B, H, Sq, Sk), attn_weights_dtype),
        ],
        compiler_params=pltpu.CompilerParams(
            dimension_semantics=("parallel", "parallel", "arbitrary")),
        cost_estimate=pl.CostEstimate(
            flops=int(attn_flops),
            transcendentals=int(B * H * Sq * Sk),
            bytes_accessed=int(attn_bytes)),
    )(q_src, k_src, v_src, mask3)

    # Concat heads (bf16 transpose) and run the final linear projection.
    concat = out_h.transpose(0, 2, 1, 3).reshape(B * Sq, D)
    out = _grouped_linear(concat, params["w_out"], params["b_out"],
                          out_dtype=jnp.float32)
    return out.reshape(B, Sq, D), attn_w


# ------------------------------ Reference (JAX) -------------------------------

def _reference_mha(q, k, v, mask, raw, num_heads):
    B, Sq, D = q.shape
    depth = D // num_heads

    def lin(x, w, b):
        return x @ w.T + b

    def split(x):
        return x.reshape(B, x.shape[1], num_heads, depth).transpose(0, 2, 1, 3)

    qh = split(lin(q, raw["wq_w"], raw["wq_b"]))
    kh = split(lin(k, raw["wk_w"], raw["wk_b"]))
    vh = split(lin(v, raw["wv_w"], raw["wv_b"]))

    logits = jnp.einsum("bhqd,bhkd->bhqk", qh, kh) / jnp.sqrt(jnp.float32(depth))
    if mask is not None:
        logits = logits + mask * (-1e9)
    w = jax.nn.softmax(logits, axis=-1)
    o = jnp.einsum("bhqk,bhkd->bhqd", w, vh)
    o = o.transpose(0, 2, 1, 3).reshape(B, Sq, D)
    return lin(o, raw["final_w"], raw["final_b"]), w


# ---------------------------------- main ---------------------------------------

if __name__ == "__main__":
    d_model = 32
    num_heads = 4
    B, S = 2, 8

    key = jax.random.PRNGKey(0)
    keys = jax.random.split(key, 12)

    # Deterministic synthetic parameters (torch.nn.Linear layout: W (out,in), b (out,))
    raw = {
        "wq_w": 0.1 * jax.random.normal(keys[0], (d_model, d_model), jnp.float32),
        "wq_b": 0.1 * jax.random.normal(keys[1], (d_model,), jnp.float32),
        "wk_w": 0.1 * jax.random.normal(keys[2], (d_model, d_model), jnp.float32),
        "wk_b": 0.1 * jax.random.normal(keys[3], (d_model,), jnp.float32),
        "wv_w": 0.1 * jax.random.normal(keys[4], (d_model, d_model), jnp.float32),
        "wv_b": 0.1 * jax.random.normal(keys[5], (d_model,), jnp.float32),
        "final_w": 0.1 * jax.random.normal(keys[6], (d_model, d_model), jnp.float32),
        "final_b": 0.1 * jax.random.normal(keys[7], (d_model,), jnp.float32),
    }
    params = prepare_params(raw)   # fused / pre-transposed, computed once

    x = jax.random.normal(keys[8], (B, S, d_model), jnp.float32)
    q2 = jax.random.normal(keys[9], (B, S, d_model), jnp.float32)

    # Compact padding mask: (B, 1, 1, Sk), 1.0 where the key position is masked.
    pad = (jax.random.uniform(keys[11], (B, 1, 1, S)) > 0.8).astype(jnp.float32)

    # bf16 intermediates / MXU operands (fp32 accumulation) -> relaxed tolerances.
    OUT_TOL = 5e-2
    W_TOL = 2e-2

    # --- self-attention (fused QKV path) ---
    out, attn_w = multi_head_attention(x, x, x, pad, params, num_heads)
    out = jax.block_until_ready(out)
    attn_w = jax.block_until_ready(attn_w)
    ref_out, ref_w = _reference_mha(x, x, x, pad, raw, num_heads)
    assert out.shape == (B, S, d_model)
    assert attn_w.shape == (B, num_heads, S, S)
    assert jnp.allclose(out, ref_out, atol=OUT_TOL, rtol=OUT_TOL)
    assert jnp.allclose(attn_w, ref_w, atol=W_TOL, rtol=W_TOL)

    # --- cross-attention (general, separate-projection path) ---
    out2, attn_w2 = multi_head_attention(q2, x, x, pad, params, num_heads)
    out2 = jax.block_until_ready(out2)
    attn_w2 = jax.block_until_ready(attn_w2)
    ref_out2, ref_w2 = _reference_mha(q2, x, x, pad, raw, num_heads)
    assert jnp.allclose(out2, ref_out2, atol=OUT_TOL, rtol=OUT_TOL)
    assert jnp.allclose(attn_w2, ref_w2, atol=W_TOL, rtol=W_TOL)

    print("KERNEL_OK")
</pallas_src>

<mosaic_0001>
module attributes {stable_mosaic.version = 11 : i64} {
  func.func @_grouped_linear_kernel(%arg0: i32, %arg1: i32, %arg2: i32, %arg3: i32, %arg4: memref<16x32xf32, #tpu.memory_space<vmem>>, %arg5: memref<1x32x32xbf16, #tpu.memory_space<vmem>>, %arg6: memref<1x1x32xf32, #tpu.memory_space<vmem>>, %arg7: memref<1x16x32xbf16, #tpu.memory_space<vmem>>, %arg8: memref<16x32xf32, #tpu.memory_space<vmem>>) attributes {dimension_semantics = [#tpu.dimension_semantics<parallel>, #tpu.dimension_semantics<parallel>, #tpu.dimension_semantics<parallel>, #tpu.dimension_semantics<arbitrary>], iteration_bounds = array<i64: 3, 1, 1, 1>, scalar_prefetch = 0 : i64, scratch_operands = 1 : i64, tpu.core_type = #tpu.core_type<tc>, window_params = [{transform_indices = @transform_0, window_bounds = array<i64: 16, 32>}, {transform_indices = @transform_1, window_bounds = array<i64: 1, 32, 32>}, {transform_indices = @transform_2, window_bounds = array<i64: 1, 1, 32>}, {transform_indices = @transform_3, window_bounds = array<i64: 1, 16, 32>}]} {
    %c0_i32 = arith.constant 0 : i32
    %0 = arith.cmpi eq, %arg3, %c0_i32 : i32
    %1 = arith.extui %0 : i1 to i32
    %c0_i32_0 = arith.constant 0 : i32
    %2 = arith.cmpi ne, %1, %c0_i32_0 : i32
    scf.if %2 {
      %cst_11 = arith.constant 0.000000e+00 : f32
      %14 = vector.broadcast %cst_11 : f32 to vector<16x32xf32>
      %c0_12 = arith.constant 0 : index
      %c0_13 = arith.constant 0 : index
      %15 = vector.load %arg8[%c0_12, %c0_13] : memref<16x32xf32, #tpu.memory_space<vmem>>, vector<16x32xf32>
      tpu.vector_store %arg8[%c0_12, %c0_13], %14 {strides = array<i32>} : memref<16x32xf32, #tpu.memory_space<vmem>>, vector<16x32xf32>,
    } else {
    }
    %c0 = arith.constant 0 : index
    %c0_1 = arith.constant 0 : index
    %3 = vector.load %arg8[%c0, %c0_1] : memref<16x32xf32, #tpu.memory_space<vmem>>, vector<16x32xf32>
    %c0_2 = arith.constant 0 : index
    %c0_3 = arith.constant 0 : index
    %4 = vector.load %arg4[%c0_2, %c0_3] : memref<16x32xf32, #tpu.memory_space<vmem>>, vector<16x32xf32>
    %5 = arith.truncf %4 : vector<16x32xf32> to vector<16x32xbf16>
    %c0_4 = arith.constant 0 : index
    %c0_5 = arith.constant 0 : index
    %c0_6 = arith.constant 0 : index
    %6 = vector.load %arg5[%c0_4, %c0_5, %c0_6] : memref<1x32x32xbf16, #tpu.memory_space<vmem>>, vector<1x32x32xbf16>
    %7 = vector.shape_cast %6 : vector<1x32x32xbf16> to vector<32x32xbf16>
    %cst = arith.constant dense<0.000000e+00> : vector<16x32xf32>
    %8 = tpu.matmul %5, %7, %cst {dimension_numbers = #tpu.dot_dimension_numbers<[1], [0], [0], [1], [0, 0, 1, 1], [], []>} : vector<16x32xbf16>, vector<32x32xbf16>, vector<16x32xf32> -> vector<16x32xf32>
    %9 = arith.addf %3, %8 : vector<16x32xf32>
    %c0_7 = arith.constant 0 : index
    %c0_8 = arith.constant 0 : index
    %10 = vector.load %arg8[%c0_7, %c0_8] : memref<16x32xf32, #tpu.memory_space<vmem>>, vector<16x32xf32>
    tpu.vector_store %arg8[%c0_7, %c0_8], %9 {strides = array<i32>} : memref<16x32xf32, #tpu.memory_space<vmem>>, vector<16x32xf32>,
    %c0_i32_9 = arith.constant 0 : i32
    %11 = arith.cmpi eq, %arg3, %c0_i32_9 : i32
    %12 = arith.extui %11 : i1 to i32
    %c0_i32_10 = arith.constant 0 : i32
    %13 = arith.cmpi ne, %12, %c0_i32_10 : i32
    scf.if %13 {
      %c0_11 = arith.constant 0 : index
      %c0_12 = arith.constant 0 : index
      %14 = vector.load %arg8[%c0_11, %c0_12] : memref<16x32xf32, #tpu.memory_space<vmem>>, vector<16x32xf32>
      %c0_13 = arith.constant 0 : index
      %c0_14 = arith.constant 0 : index
      %c0_15 = arith.constant 0 : index
      %15 = vector.load %arg6[%c0_13, %c0_14, %c0_15] : memref<1x1x32xf32, #tpu.memory_space<vmem>>, vector<1x1x32xf32>
      %16 = vector.shape_cast %15 : vector<1x1x32xf32> to vector<1x32xf32>
      %17 = vector.broadcast %16 : vector<1x32xf32> to vector<16x32xf32>
      %18 = arith.addf %14, %17 : vector<16x32xf32>
      %19 = arith.truncf %18 : vector<16x32xf32> to vector<16x32xbf16>
      %c0_16 = arith.constant 0 : index
      %c0_17 = arith.constant 0 : index
      %c0_18 = arith.constant 0 : index
      %20 = vector.load %arg7[%c0_16, %c0_17, %c0_18] : memref<1x16x32xbf16, #tpu.memory_space<vmem>>, vector<1x16x32xbf16>
      %21 = vector.shape_cast %20 : vector<1x16x32xbf16> to vector<16x32xbf16>
      %22 = vector.shape_cast %19 : vector<16x32xbf16> to vector<1x16x32xbf16>
      tpu.vector_store %arg7[%c0_16, %c0_17, %c0_18], %22 {strides = array<i32>} : memref<1x16x32xbf16, #tpu.memory_space<vmem>>, vector<1x16x32xbf16>,
    } else {
    }
    return
  }
  func.func @transform_0(%arg0: i32, %arg1: i32, %arg2: i32, %arg3: i32) -> (i32, i32) {
    %c0_i32 = arith.constant 0 : i32
    return %arg1, %arg3 : i32, i32
  }
  func.func @transform_1(%arg0: i32, %arg1: i32, %arg2: i32, %arg3: i32) -> (i32, i32, i32) {
    %c0_i32 = arith.constant 0 : i32
    return %arg0, %arg3, %arg2 : i32, i32, i32
  }
  func.func @transform_2(%arg0: i32, %arg1: i32, %arg2: i32, %arg3: i32) -> (i32, i32, i32) {
    %c0_i32 = arith.constant 0 : i32
    %c0_i32_0 = arith.constant 0 : i32
    return %arg0, %c0_i32, %arg2 : i32, i32, i32
  }
  func.func @transform_3(%arg0: i32, %arg1: i32, %arg2: i32, %arg3: i32) -> (i32, i32, i32) {
    %c0_i32 = arith.constant 0 : i32
    return %arg0, %arg1, %arg2 : i32, i32, i32
  }
}

</mosaic_0001>

<bundles_post_ra>
// kernel: tpu_custom_call.1
= control target key start
LH: loop header
LB: loop body
LE: loop exit
PB: predicated region body
PF: predicated region fallthrough
CT: control target
= control target key end

     0   :  { %8 = vsyncpa [#allocation4], 0  ;;  %s1049_s0 = inlined_call_operand.hbm [shape: f32[16,32], index: 0, kind: input, shape index: {}]   ;;  %s1050_s1 = inlined_call_operand.hbm [shape: bf16[3,32,32], index: 1, kind: input, shape index: {}]   ;;  %s1051_s2 = inlined_call_operand.vmem [shape: f32[3,1,32], index: 2, kind: input, shape index: {}]   ;;  %s1052_s3 = inlined_call_operand.hbm [shape: bf16[3,16,32], index: 3, kind: output, shape index: {}]  }
   0x1   :  { %9 = vsyncpa [#allocation7], 0 }
   0x2   :  { %11 = vsyncpa [#allocation7 + $0x1], 0 }
   0x3   :  { %12 = vsyncpa [#allocation5], 0 }
   0x4   :  { %14 = vsyncpa [#allocation5 + $0x1], 0  ;;  %s821_s12 = smov 0   ;;  %s823_s13 = smov 0  }
   0x5   :  { %s825_s14 = smov 0   ;;  %s827_s15 = smov 0  }
   0x6   :  { %s829_s16 = smov 0   ;;  %s831_s17 = smov 0  }
   0x7 LB: > { %s523_s18 = sadd.s32 4294967295, %s788_s17   ;;  %s524_s19 = sadd.s32 4294967294, %s788_s17   ;;  %s788_s17 = sphi %s831_s17, %s20_s17   ;;  %s784_s16 = sphi %s829_s16, %s1075_s16   ;;  %s780_s15 = sphi %s827_s15, %s1074_s15   ;;  %s776_s14 = sphi %s825_s14, %s1073_s14   ;;  %s772_s13 = sphi %s823_s13, %s1072_s13   ;;  %s768_s12 = sphi %s821_s12, %s1071_s12  }
   0x8   : > { %p98_p0 = scmp.ne.s32.totalorder %s772_s13, %s768_s12  ;;  %p855_p1 = scmp.eq.s32.totalorder %s523_s18, 0 }
   0x9   : > { %p859_p2 = scmp.eq.s32.totalorder %s523_s18, 2  ;;  %p160_p3 = scmp.eq.s32.totalorder %s524_s19, 2 }
   0xa   : > { %s1057_s20 = scalar_select %p855_p1, 1, 0 }
   0xb   : > { %s1058_s21 = scalar_select %p859_p2, 1, 0 }
   0xc   : > { %p865_p4 = por %p855_p1, %p98_p0  ;;  %p525_p5 = scmp.ge.s32.totalorder %s788_s17, 1 }
   0xd   : > { %p870_p6 = por %p160_p3, %p98_p0  ;;  %p167_p7 = scmp.lt.s32.totalorder %s788_s17, 4 }
   0xe   : > { %s1059_s22 = scalar_select %p865_p4, 1, 0 }
   0xf   : > { %s1060_s23 = scalar_select %p870_p6, 1, 0 }
  0x10   : > { %p875_p8 = pnand %p525_p5, %p167_p7  ;;  %s790_s25 = smov [#allocation3]  }
  0x11   : > { %s183_s26 = sshll.u32 %s790_s25, 4  ;;  %s46_s28 = sadd.s32 1, %s784_s16  ;;  %s184_s26 = int_to_ptr.vmem [resolvable:$true] %s183_s26 }
  0x12   : > { %s1061_s24 = scalar_select %p875_p8, 1, 0 }
  0x13   : > { %p569_p9 = pneg %p875_p8  ;;  %s644_s4 = scalar_lea.hbm %s1049_s0, 256 }
  0x14   : > { %p645_p11 = scmp.ne.s32.totalorder %s1049_s0, %s644_s4  ;;  %p651_p3 = scmp.lt.u32.totalorder %s644_s4, %s1049_s0 }
  0x15   : > { %p883_p10 = pnand %p569_p9, %p855_p1 }
  0x17   : > { %p646_p12 = pneg %p883_p10 }
  0x19   : > { %p647_p13 = pnand %p646_p12, %p645_p11 }
  0x1b   : > { %p648_p0 = pneg %p647_p13 }
  0x1d   : > { %p653_p5 = pnand %p651_p3, %p648_p0 }
  0x1f   : > { %656 = shalt.err (!%p653_p5)
}
  0x20   : > { %s657_s9 = scalar_lea.vmem %s184_s26, 256  ;;  %p665_p4 = scmp.lt.s32.totalorder %s184_s26, %s184_s26 }
  0x21   : > { %p658_p7 = scmp.ne.s32.totalorder %s184_s26, %s657_s9  ;;  %p666_p1 = scmp.lt.s32.totalorder %s657_s9, %s657_s9 }
  0x23   : > { %p660_p9 = pnand %p658_p7, %p646_p12  ;;  %p667_p8 = por %p666_p1, %p665_p4 }
  0x25   : > { %p661_p6 = pneg %p660_p9 }
  0x27   : > { %p668_p2 = pnand %p667_p8, %p661_p6 }
  0x29   : > { %671 = shalt.err (!%p668_p2)
}
  0x2a   : > { %s791_s10 = smov 128   ;;  %s792_s11 = smov 8  }
  0x2b   : > { %572 = dma.hbm_to_vmem [thread:$0]  (!%p883_p10), %s1049_s0, 256, %s184_s26, [#allocation4], %s791_s10, %s791_s10, %s792_s11  }
  0x2c   : > { %p48_p1 = scmp.ge.s32.totalorder %s46_s28, 3  ;;  %s85_s25 = sadd.s32 1, %s776_s14 }
  0x2d   : > { %p92_p2 = scmp.ne.s32.totalorder %s776_s14, %s772_s13  ;;  %p93_p4 = scmp.eq.s32.totalorder %s788_s17, 0 }
  0x2e   : > { %s1077_s28 = smov (%p48_p1, %s46_s28), 0  ;;  %p1064_p8 = scmp.ne.s32.totalorder %s1058_s21, 0 }
  0x2f   : > { %p910_p6 = por %p93_p4, %p92_p2  ;;  %s78_s27 = ssub.s32 %s784_s16, %s1077_s28 }
  0x30   : > { %p916_p11 = por %p1064_p8, %p92_p2  ;;  %p582_p12 = scmp.lt.s32.totalorder %s788_s17, 3 }
  0x31   : > { %p83_p10 = scmp.eq.s32.totalorder %s78_s27, 0  ;;  %s197_s26 = sand.u32 1, %s776_s14  }
  0x32   : > { %s528_s4 = sshll.u32 %s197_s26, 4  ;;  %s546_s6 = sshll.u32 %s784_s16, 8 }
  0x33   : > { %s925_s5 = scalar_select %p83_p10, %s776_s14, %s85_s25  }
  0x34   : > { %s931_s9 = scalar_lea.hbm %s1050_s1, %s546_s6  ;;  %s201_s21 = scalar_lea.vmem [#allocation6], %s528_s4 }
  0x35   : > { %s211_s10 = sshll.u32 %s201_s21, 4  ;;  %p937_p13 = pnand %p582_p12, %p910_p6  ;;  %s933_s10 = int_to_ptr.vmem [resolvable:$true] %s211_s10 }
  0x36   : > { %s941_s18 = scalar_lea.sflag [#allocation7], %s197_s26  ;;  %s672_s19 = scalar_lea.hbm %s931_s9, 256 }
  0x37   : > { %p673_p0 = scmp.ne.s32.totalorder %s931_s9, %s672_s19  ;;  %p674_p3 = pneg %p937_p13 }
  0x38   : > { %s677_s29 = scalar_lea.hbm %s1050_s1, 768  ;;  %p678_p9 = scmp.lt.u32.totalorder %s931_s9, %s1050_s1 }
  0x39   : > { %p675_p5 = pnand %p674_p3, %p673_p0  ;;  %p679_p1 = scmp.lt.u32.totalorder %s677_s29, %s672_s19 }
  0x3a   : > { %p681_p4 = scmp.lt.u32.totalorder %s672_s19, %s931_s9 }
  0x3b   : > { %p676_p7 = pneg %p675_p5  ;;  %p680_p2 = por %p679_p1, %p678_p9 }
  0x3d   : > { %p682_p6 = por %p681_p4, %p680_p2 }
  0x3f   : > { %p683_p8 = pnand %p682_p6, %p676_p7 }
  0x41   : > { %686 = shalt.err (!%p683_p8)
}
  0x42   : > { %s687_s26 = scalar_lea.vmem %s933_s10, 256  ;;  %s793_s7 = smov [#allocation6]  }
  0x43   : > { %p688_p12 = scmp.ne.s32.totalorder %s933_s10, %s687_s26  ;;  %s692_s8 = sshll.u32 %s793_s7, 4  ;;  %s693_s8 = int_to_ptr.vmem [resolvable:$false] %s692_s8 }
  0x44   : > { %s694_s21 = scalar_lea.vmem %s693_s8, 512  ;;  %p695_p5 = scmp.lt.s32.totalorder %s933_s10, %s693_s8 }
  0x45   : > { %p690_p10 = pnand %p688_p12, %p674_p3  ;;  %p696_p9 = scmp.lt.s32.totalorder %s694_s21, %s687_s26 }
  0x47   : > { %p691_p0 = pneg %p690_p10  ;;  %p697_p1 = por %p696_p9, %p695_p5 }
  0x49   : > { %p698_p2 = pnand %p697_p1, %p691_p0 }
  0x4b   : > { %701 = shalt.err (!%p698_p2)
}
  0x4c   : > { %s794_s19 = smov 64   ;;  %s795_s25 = smov 4  }
  0x4d   : > { %576 = dma.hbm_to_vmem [thread:$0]  (!%p937_p13), %s931_s9, 256, %s933_s10, %s941_s18, %s794_s19, %s794_s19, %s795_s25  }
  0x4e   : > { %p1067_p3 = scmp.ne.s32.totalorder %s1061_s24, 0 }
  0x4f   : > { %p1068_p7 = scmp.ne.s32.totalorder (!%p1067_p3), %s1057_s20, 0 }
  0x50   : > { %232 = sbr.rel (%p1067_p3) target bundleno = 344 (0x158), region = 32 }
  0x57   : > { %755 = dma.done.wait (%p1068_p7), [#allocation4], 256  }
  0x58   : > { %757 = vsyncadd (%p1068_p7), [#allocation4], 4294967040  ;;  %s976_s27 = sand.u32 1, %s772_s13   ;;  %p1069_p4 = scmp.ne.s32.totalorder %s1059_s22, 0 }
  0x59   : > { %s533_s29 = sshll.u32 %s976_s27, 4  ;;  %s239_s4 = scalar_lea.sflag [#allocation7], %s976_s27 }
  0x5a   : > { %s242_s6 = scalar_lea.vmem [#allocation6], %s533_s29 }
  0x5b   : > { %759 = dma.done.wait (%p1069_p4), %s239_s4, 256  }
  0x5c   : > { %761 = vsyncadd (%p1069_p4), %s239_s4, 4294967040  ;;  %vm285_vm0 = vcmask 261120   ;;  %v796_v0 = vmov 0.0   ;;  %vm797_vm1 = vmmov 0   ;;  %v642_v1 = vld [vmem:[%s242_s6] sm:$0xff]   ;;  %v643_v2 = vld [vmem:[%s242_s6 + $0x8] sm:$0xff]  }
  0x5d   : > { %553 = vmatprep.subr.bf16.mxu0 %v796_v0  ;;  %557 = vmatprep.mubr.msk.bf16.mxu0 %vm797_vm1, %v796_v0  ;;  %286 = vst.msk [vmem:[#allocation2] sm:$0xff] %vm285_vm0, %v796_v0  ;;  %287 = vst.msk [vmem:[#allocation2 + $0x8] sm:$0xff] %vm285_vm0, %v796_v0  ;;  %v290_v3 = vld [vmem:[#allocation3] sm:$0xff]  ;;  %v291_v4 = vld [vmem:[#allocation3 + $0x8] sm:$0xff]  ;;  %p273_p13 = scmp.lt.s32.totalorder %s780_s15, 2  ;;  %s534_s22 = sshll.u32 %s976_s27, 3 }
  0x5e   : > { %554 = vmatpush3.bf16.msra.mxu0 %v642_v1  ;;  %v292_v5 = vpack.c.bf16 %v291_v4, %v290_v3  ;;  %s549_s11 = sshll.u32 %s780_s15, 7  ;;  %s270_s18 = scalar_lea.vmem [#allocation8], %s534_s22  ;;  %vm380_vm2 = vcmask 257024  }
  0x5f   : > { %555 = vmatprep.subr.bf16.mxu0 %v796_v0  ;;  %s274_s20 = scalar_select %p273_p13, %s780_s15, 2 }
  0x60   : > { %s400_s26 = sshll.u32 %s270_s18, 4  ;;  %s999_s21 = scalar_lea.hbm %s1052_s3, %s549_s11  ;;  %s1001_s26 = int_to_ptr.vmem [resolvable:$true] %s400_s26 }
  0x61   : > { %s278_s10 = scalar_lea.vmem %s1051_s2, %s274_s20  ;;  %s384_s15 = scalar_lea.sflag [#allocation5], %s976_s27 }
  0x62   : > { %556 = vmatpush3.bf16.msra.mxu0 %v643_v2  ;;  %v538_v14 = vld [vmem:[%s278_s10] ss:$0 sm:$0xff]  ;;  %s702_s19 = scalar_lea.vmem %s1001_s26, 128  ;;  %s798_s25 = smov [#allocation8]  }
  0x63   : > { %p703_p6 = scmp.ne.s32.totalorder %s1001_s26, %s702_s19  ;;  %s706_s29 = sshll.u32 %s798_s25, 4  ;;  %s707_s29 = int_to_ptr.vmem [resolvable:$false] %s706_s29 }
  0x64   : > { %v288_v6 = vld [vmem:[#allocation2] sm:$0xff]  ;;  %v289_v8 = vld [vmem:[#allocation2 + $0x8] sm:$0xff]  ;;  %s708_s4 = scalar_lea.vmem %s707_s29, 256  ;;  %p709_p10 = scmp.lt.s32.totalorder %s1001_s26, %s707_s29 }
  0x65   : > { %558 = vmatmul.mubr.msk.bf16.vlgmr.msra.gmra.mrb[0].mxu0 %vm285_vm0, %v292_v5  ;;  %p704_p8 = pnand %p703_p6, %p916_p11  ;;  %p710_p0 = scmp.lt.s32.totalorder %s708_s4, %s702_s19 }
  0x67   : > { %p705_p12 = pneg %p704_p8  ;;  %p711_p5 = por %p710_p0, %p709_p10 }
  0x69   : > { %p712_p9 = pnand %p711_p5, %p705_p12 }
 0x138   : > { %v347_v7 = vpop.f32.mrb[0].mxu0 }
 0x139   : > { %v354_v9 = vadd.f32 %v347_v7, %v288_v6  ;;  %v559_v10 = vpop.f32.mrb[1].mxu0 }
 0x13a   : > { %v350_v11 = vpop.f32.mrb[2].mxu0 }
 0x13b   : > { %356 = vst.msk [vmem:[#allocation2] sm:$0xff] %vm285_vm0, %v354_v9  ;;  %v355_v12 = vadd.f32 %v350_v11, %v289_v8  ;;  %v560_v13 = vpop.f32.mrb[3].mxu0 }
 0x13d   : > { %357 = vst.msk [vmem:[#allocation2 + $0x8] sm:$0xff] %vm285_vm0, %v355_v12 }
 0x142   : > { %v361_v15 = vld [vmem:[#allocation2] sm:$0xff] }
 0x143   : > { %v370_v16 = vadd.f32 %v538_v14, %v361_v15 }
 0x144   : > { %v362_v17 = vld [vmem:[#allocation2 + $0x8] sm:$0xff] }
 0x145   : > { %v371_v18 = vadd.f32 %v538_v14, %v362_v17  ;;  %v547_v19 = vpack.c.bf16 %v370_v16, %v370_v16 }
 0x147   : > { %v548_v20 = vpack.c.bf16 %v371_v18, %v371_v18  ;;  %381 = vst.msk [vmem:[%s270_s18] sm:$0xf] %vm380_vm2, %v547_v19 }
 0x149   : > { %382 = vst.msk [vmem:[%s270_s18 + $0x4] sm:$0xf] %vm380_vm2, %v548_v20 }
 0x14a   : > { %715 = shalt.err (!%p712_p9)
}
 0x14b   : > { %s716_s6 = scalar_lea.hbm %s999_s21, 128  ;;  %s720_s24 = scalar_lea.hbm %s1052_s3, 384 }
 0x14c   : > { %p717_p1 = scmp.ne.s32.totalorder %s999_s21, %s716_s6  ;;  %p721_p7 = scmp.lt.u32.totalorder %s999_s21, %s1052_s3 }
 0x14d   : > { %p722_p4 = scmp.lt.u32.totalorder %s720_s24, %s716_s6  ;;  %p724_p6 = scmp.lt.u32.totalorder %s716_s6, %s999_s21 }
 0x14e   : > { %p718_p2 = pnand %p717_p1, %p916_p11 }
 0x14f   : > { %p723_p13 = por %p722_p4, %p721_p7 }
 0x150   : > { %p719_p3 = pneg %p718_p2 }
 0x151   : > { %p725_p8 = por %p724_p6, %p723_p13 }
 0x153   : > { %p726_p12 = pnand %p725_p8, %p719_p3 }
 0x155   : > { %729 = shalt.err (!%p726_p12)
}
 0x156   : > { %s799_s11 = smov 64   ;;  %s800_s18 = smov 4  }
 0x157   : > { %567 = dma.vmem_to_hbm [thread:$0]  (%p916_p11), %s1001_s26, 128, %s999_s21, %s384_s15, %s799_s11, %s799_s11, %s800_s18  }
 0x158 PF: > { %p584_p10 = scmp.ge.s32.totalorder %s788_s17, 2  ;;  %s415_s7 = sand.u32 1, %s768_s12  }
 0x159   : > { %p1070_p0 = scmp.ne.s32.totalorder %s1060_s23, 0  ;;  %s416_s8 = scalar_lea.sflag [#allocation5], %s415_s7 }
 0x15b   : > { %p578_p5 = pnand %p584_p10, %p1070_p0 }
 0x15d   : > { %763 = dma.done.wait (!%p578_p5), %s416_s8, 128  }
 0x15e   : > { %765 = vsyncadd (!%p578_p5), %s416_s8, 4294967168  ;;  %s20_s17 = sadd.s32 1, %s788_s17   ;;  %s1071_s12 = smov %s772_s13 }
 0x15f   : > { %p17_p9 = scmp.ge.s32.totalorder %s20_s17, 5   ;;  %s1072_s13 = smov %s776_s14 }
 0x160   : > { %s1073_s14 = smov %s925_s5  ;;  %s1074_s15 = smov %s784_s16 }
 0x161   : > { %s1075_s16 = smov %s1077_s28  ;;  %19 = sbr.rel (!%p17_p9) target bundleno = 7 (0x7), region = 94 }
 0x168   :  { %421 = vsyncpa [#allocation4], 1 }
 0x169   :  { %423 = vsyncpa [#allocation4 + $0x1], 1 }
 0x16a   :  { %424 = vsyncpa [#allocation7], 1 }
 0x16b   :  { %426 = vsyncpa [#allocation7 + $0x1], 1 }
 0x16c   :  { %427 = vsyncpa [#allocation5], 1 }
 0x16d   :  { %429 = vsyncpa [#allocation5 + $0x1], 1 }

</bundles_post_ra>
